<compile_context>
chip_gen: v7x
topology: tpu7x:2x2x1
jax: 0.10.0
libtpu: 0.0.40
codegen_flags: <defaults>
</compile_context>

<pallas_src>
import functools

import jax
import jax.numpy as jnp
from jax import lax
from jax.experimental import pallas as pl
from jax.experimental.pallas import tpu as pltpu  # noqa: F401  (no grid/scratch needed)

# ---- small, module-consistent hyper-parameters -----------------------------
B = 2            # batch
C_IN = 4         # experts[0].in_channels
C_OUT = 32       # experts[0].out_channels
H = W = 16       # spatial
E = 3            # number of experts
NUM_CLASSES = 10
KH = KW = 3      # expert conv kernel
TAPS = KH * KW
HW = H * W
NHEAD = NUM_CLASSES + 2   # fused classifier (10) + domain (2) head width
EC = E * C_OUT            # 96 real "expert x channel" columns
LANES = 128               # lane-padded width used everywhere in-kernel
NEG_INF = -1e30           # softmax pad value (exp underflows to exactly 0)

# params-slab row layout (all rows 128 lanes wide)
ROW_B_ALL = 0             # conv biases for all experts (zero-padded)
ROW_GATE1 = 1             # task-1 gate logits, each repeated C_OUT times
ROW_GATE2 = 2             # task-2 gate logits, each repeated C_OUT times
ROW_B_HEAD = 3            # [classifier bias | domain bias | 0 ...]
ROW_W_HEAD = 8            # rows 8..135: tiled [wc | wd] head weights (128, 128)
SLAB_ROWS = ROW_W_HEAD + LANES   # 136


# ---------------------------------------------------------------------------
# Fused kernel: expert convs -> ReLU -> GAP (on MXU) -> gate softmax ->
#               mixture -> fused classifier/domain heads -> one packed store.
#
#   patches : (B*HW, TAPS*C_IN)   im2col'd NHWC input (all batches)
#   w_all   : (TAPS*C_IN, 128)    all experts' conv weights, lane-padded
#   params  : (136, 128)          packed parameter slab (see row layout above)
#   out     : (8, 128) f32 slab:
#               rows 0..B-1, cols 0..NHEAD-1        -> [cls | dom]
#               row  B,      cols 0..EC-1           -> replicated task_weight
# ---------------------------------------------------------------------------
def fused_kernel(patches_ref, w_all_ref, params_ref, out_ref, *, gate_row):
    # --- all E experts' 3x3 convs as ONE im2col matmul + bias + ReLU --------
    acts = jnp.dot(patches_ref[...], w_all_ref[...],
                   preferred_element_type=jnp.float32)              # (B*HW, 128)
    acts = jnp.maximum(acts + params_ref[ROW_B_ALL:ROW_B_ALL + 1, :], 0.0)

    # --- global average pool on the MXU: feats = sel @ acts -----------------
    # sel[b, i] = 1/HW if row i belongs to batch b else 0 (iota-built, no DMA).
    row = lax.broadcasted_iota(jnp.int32, (B, B * HW), 0)
    col = lax.broadcasted_iota(jnp.int32, (B, B * HW), 1)
    d = col - row * HW
    sel = jnp.where((d >= 0) & (d < HW), 1.0 / HW, 0.0).astype(jnp.float32)
    feats = jnp.dot(sel, acts, preferred_element_type=jnp.float32)  # (B, 128)

    # --- gate softmax on the lane-replicated logits --------------------------
    # Each of the E logits is repeated C_OUT times; pad lanes hold -1e30 so
    # exp underflows to 0.  Lane-sum = C_OUT * (sum over E) -> rescale by 1/C_OUT.
    g = params_ref[gate_row:gate_row + 1, :]                        # (1, 128)
    g = g - jnp.max(g, axis=-1, keepdims=True)
    eg = jnp.exp(g)
    denom = jnp.sum(eg, axis=-1, keepdims=True) * (1.0 / C_OUT)
    tw_rep = eg / denom                 # softmax(gates), each weight x C_OUT

    # --- expert mixture (VPU) + fused classifier/domain head (MXU) ----------
    # TODO(synk): ReverseLayerF(alpha) only flips gradients in the backward
    # pass; forward is identity, so the domain head sees `features` unchanged.
    weighted = feats * tw_rep                                       # (B, 128)
    head = jnp.dot(weighted, params_ref[ROW_W_HEAD:ROW_W_HEAD + LANES, :],
                   preferred_element_type=jnp.float32)
    head = head + params_ref[ROW_B_HEAD:ROW_B_HEAD + 1, :]          # (B, 128)

    # --- single lane-dense (8, 128) output store, built in registers --------
    fill = jnp.zeros((out_ref.shape[0] - B - 1, LANES), jnp.float32)
    out_ref[...] = jnp.concatenate([head, tw_rep, fill], axis=0)


def run_fused(patches, w_all, slab, task_ind):
    # No grid: single invocation, all operands are full-array VMEM blocks
    # (working set << VMEM on every TPU generation).
    flops = (2 * (B * HW) * (TAPS * C_IN) * LANES   # expert convs
             + 2 * B * (B * HW) * LANES             # GAP selector matmul
             + 2 * B * LANES * LANES)               # fused heads
    bytes_accessed = 4 * (patches.size + w_all.size + slab.size + 8 * LANES)
    return pl.pallas_call(
        functools.partial(fused_kernel, gate_row=ROW_GATE1 + task_ind - 1),
        out_shape=jax.ShapeDtypeStruct((8, LANES), jnp.float32),
        cost_estimate=pl.CostEstimate(flops=flops, transcendentals=LANES,
                                      bytes_accessed=bytes_accessed),
    )(patches, w_all, slab)


# ---------------------------------------------------------------------------
# One-time parameter re-layout (hoisted out of the per-call jit).
# ---------------------------------------------------------------------------
def pack_params(params):
    # all experts' conv weights stacked along lanes: column = e*C_OUT + c_out
    w_all = jnp.transpose(params["conv_w"].reshape(E, TAPS * C_IN, C_OUT),
                          (1, 0, 2)).reshape(TAPS * C_IN, EC)
    w_all = jnp.pad(w_all, ((0, 0), (0, LANES - EC)))                # (36, 128)

    b_all = jnp.pad(params["conv_b"].reshape(1, EC),
                    ((0, 0), (0, LANES - EC)))                       # (1, 128)

    gate_rows = []
    for t in range(2):
        g = jnp.repeat(params["gates"][t], C_OUT)[None, :]           # (1, 96)
        gate_rows.append(jnp.pad(g, ((0, 0), (0, LANES - EC)),
                                 constant_values=NEG_INF))           # (1, 128)

    b_head = jnp.concatenate([params["bc"], params["bd"]])[None, :]  # (1, 12)
    b_head = jnp.pad(b_head, ((0, 0), (0, LANES - NHEAD)))           # (1, 128)

    w_head = jnp.concatenate([params["wc"], params["wd"]], axis=1)   # (C_OUT, 12)
    w_head = jnp.tile(w_head, (E, 1))                                # (96, 12)
    w_head = jnp.pad(w_head, ((0, LANES - EC), (0, LANES - NHEAD)))  # (128, 128)

    fill = jnp.zeros((ROW_W_HEAD - 4, LANES), jnp.float32)           # rows 4..7
    slab = jnp.concatenate(
        [b_all, gate_rows[0], gate_rows[1], b_head, fill, w_head],
        axis=0).astype(jnp.float32)                                  # (136, 128)
    assert slab.shape == (SLAB_ROWS, LANES)
    return {"w_all": w_all.astype(jnp.float32), "slab": slab}


# ---------------------------------------------------------------------------
# Forward wrapper
# ---------------------------------------------------------------------------
@functools.partial(jax.jit, static_argnames=("task_ind",))
def fe_param_dann_forward(packed, x_nchw, alpha, task_ind):
    assert task_ind in (1, 2)
    del alpha  # only used by the gradient-reversal backward pass

    # im2col glue (fuses into the surrounding XLA graph): NCHW -> NHWC,
    # SAME padding, 3x3 taps -> (B*HW, TAPS*C_IN)
    x = jnp.transpose(x_nchw, (0, 2, 3, 1)).astype(jnp.float32)
    xpad = jnp.pad(x, ((0, 0), (1, 1), (1, 1), (0, 0)))
    taps = [xpad[:, dy:dy + H, dx:dx + W, :]
            for dy in range(KH) for dx in range(KW)]
    patches = jnp.concatenate(taps, axis=-1).reshape(B * HW, TAPS * C_IN)

    out = run_fused(patches, packed["w_all"], packed["slab"], task_ind)

    cls = out[0:B, 0:NUM_CLASSES]
    dom = out[0:B, NUM_CLASSES:NHEAD]
    tw = out[B:B + 1, 0:EC:C_OUT]          # lanes 0, C_OUT, 2*C_OUT -> (1, E)
    return cls, dom, tw


# ---------------------------------------------------------------------------
# deterministic parameter init + pure-JAX reference for verification
# ---------------------------------------------------------------------------
def init_params(key):
    ks = jax.random.split(key, 7)
    return {
        "conv_w": 0.1 * jax.random.normal(ks[0], (E, KH, KW, C_IN, C_OUT),
                                          jnp.float32),
        "conv_b": 0.1 * jax.random.normal(ks[1], (E, C_OUT), jnp.float32),
        "gates": jax.random.normal(ks[2], (2, E), jnp.float32),
        "wc": 0.1 * jax.random.normal(ks[3], (C_OUT, NUM_CLASSES), jnp.float32),
        "bc": 0.1 * jax.random.normal(ks[4], (NUM_CLASSES,), jnp.float32),
        "wd": 0.1 * jax.random.normal(ks[5], (C_OUT, 2), jnp.float32),
        "bd": 0.1 * jax.random.normal(ks[6], (2,), jnp.float32),
    }


def reference_forward(params, x_nchw, task_ind):
    x = jnp.transpose(x_nchw, (0, 2, 3, 1))
    feats = []
    for e in range(E):
        y = jax.lax.conv_general_dilated(
            x, params["conv_w"][e], (1, 1), "SAME",
            dimension_numbers=("NHWC", "HWIO", "NHWC"))
        y = jnp.maximum(y + params["conv_b"][e], 0.0)
        feats.append(jnp.mean(y, axis=(1, 2)))
    feats = jnp.stack(feats, 0)                                   # (E, B, C)
    tw = jax.nn.softmax(params["gates"][task_ind - 1])[None, :]   # (1, E)
    mixed = jnp.einsum("e,ebc->bc", tw[0], feats)
    cls = mixed @ params["wc"] + params["bc"]
    dom = mixed @ params["wd"] + params["bd"]
    return cls, dom, tw


if __name__ == "__main__":
    key = jax.random.PRNGKey(0)
    pkey, xkey = jax.random.split(key)
    params = init_params(pkey)
    packed = pack_params(params)   # one-time layout, outside the per-call jit
    x = jax.random.normal(xkey, (B, C_IN, H, W), jnp.float32)  # NCHW like torch
    alpha = 0.5

    for task_ind in (1, 2):
        cls, dom, tw = fe_param_dann_forward(packed, x, alpha, task_ind)
        jax.block_until_ready((cls, dom, tw))
        rcls, rdom, rtw = reference_forward(params, x, task_ind)
        assert jnp.allclose(cls, rcls, rtol=1e-3, atol=1e-3)
        assert jnp.allclose(dom, rdom, rtol=1e-3, atol=1e-3)
        assert jnp.allclose(tw, rtw, rtol=1e-3, atol=1e-3)
    print("KERNEL_OK")
</pallas_src>

<mosaic_0001>
module attributes {stable_mosaic.version = 11 : i64} {
  func.func @fused_kernel(%arg0: memref<512x36xf32, #tpu.memory_space<vmem>>, %arg1: memref<36x128xf32, #tpu.memory_space<vmem>>, %arg2: memref<136x128xf32, #tpu.memory_space<vmem>>, %arg3: memref<8x128xf32, #tpu.memory_space<vmem>>) attributes {dimension_semantics = [], scalar_prefetch = 0 : i64, scratch_operands = 0 : i64, tpu.core_type = #tpu.core_type<tc>} {
    %c0 = arith.constant 0 : index
    %c0_0 = arith.constant 0 : index
    %0 = vector.load %arg0[%c0, %c0_0] : memref<512x36xf32, #tpu.memory_space<vmem>>, vector<512x36xf32>
    %c0_1 = arith.constant 0 : index
    %c0_2 = arith.constant 0 : index
    %1 = vector.load %arg1[%c0_1, %c0_2] : memref<36x128xf32, #tpu.memory_space<vmem>>, vector<36x128xf32>
    %cst = arith.constant dense<0.000000e+00> : vector<512x128xf32>
    %2 = tpu.matmul %0, %1, %cst {dimension_numbers = #tpu.dot_dimension_numbers<[1], [0], [0], [1], [0, 0, 1, 1], [], []>} : vector<512x36xf32>, vector<36x128xf32>, vector<512x128xf32> -> vector<512x128xf32>
    %c0_3 = arith.constant 0 : index
    %c0_4 = arith.constant 0 : index
    %3 = vector.load %arg2[%c0_3, %c0_4] : memref<136x128xf32, #tpu.memory_space<vmem>>, vector<1x128xf32>
    %4 = vector.broadcast %3 : vector<1x128xf32> to vector<512x128xf32>
    %5 = arith.addf %2, %4 : vector<512x128xf32>
    %cst_5 = arith.constant 0.000000e+00 : f32
    %6 = vector.broadcast %cst_5 : f32 to vector<512x128xf32>
    %7 = arith.maximumf %5, %6 : vector<512x128xf32>
    %8 = tpu.iota {dimensions = array<i32: 0>} : vector<2x512xi32>
    %9 = tpu.iota {dimensions = array<i32: 1>} : vector<2x512xi32>
    %c256_i32 = arith.constant 256 : i32
    %10 = vector.broadcast %c256_i32 : i32 to vector<2x512xi32>
    %11 = arith.muli %8, %10 : vector<2x512xi32>
    %12 = arith.subi %9, %11 : vector<2x512xi32>
    %c0_i32 = arith.constant 0 : i32
    %13 = vector.broadcast %c0_i32 : i32 to vector<2x512xi32>
    %14 = arith.cmpi sge, %12, %13 : vector<2x512xi32>
    %c256_i32_6 = arith.constant 256 : i32
    %15 = vector.broadcast %c256_i32_6 : i32 to vector<2x512xi32>
    %16 = arith.cmpi slt, %12, %15 : vector<2x512xi32>
    %17 = arith.andi %14, %16 : vector<2x512xi1>
    %cst_7 = arith.constant 3.906250e-03 : f32
    %cst_8 = arith.constant 0.000000e+00 : f32
    %18 = vector.broadcast %cst_7 : f32 to vector<2x512xf32>
    %19 = vector.broadcast %cst_8 : f32 to vector<2x512xf32>
    %20 = arith.select %17, %18, %19 : vector<2x512xi1>, vector<2x512xf32>
    %cst_9 = arith.constant dense<0.000000e+00> : vector<2x128xf32>
    %21 = tpu.matmul %20, %7, %cst_9 {dimension_numbers = #tpu.dot_dimension_numbers<[1], [0], [0], [1], [0, 0, 1, 1], [], []>} : vector<2x512xf32>, vector<512x128xf32>, vector<2x128xf32> -> vector<2x128xf32>
    %c1 = arith.constant 1 : index
    %c0_10 = arith.constant 0 : index
    %22 = vector.load %arg2[%c1, %c0_10] : memref<136x128xf32, #tpu.memory_space<vmem>>, vector<1x128xf32>
    %cst_11 = arith.constant dense<0xFF800000> : vector<1xf32>
    %23 = vector.multi_reduction <maximumf>, %22, %cst_11 [1] : vector<1x128xf32> to vector<1xf32>
    %24 = vector.shape_cast %23 : vector<1xf32> to vector<1x1xf32>
    %25 = vector.broadcast %24 : vector<1x1xf32> to vector<1x128xf32>
    %26 = arith.subf %22, %25 : vector<1x128xf32>
    %27 = math.exp %26 : vector<1x128xf32>
    %cst_12 = arith.constant dense<0.000000e+00> : vector<1xf32>
    %28 = vector.multi_reduction <add>, %27, %cst_12 [1] : vector<1x128xf32> to vector<1xf32>
    %29 = vector.shape_cast %28 : vector<1xf32> to vector<1x1xf32>
    %cst_13 = arith.constant 3.125000e-02 : f32
    %30 = vector.broadcast %cst_13 : f32 to vector<1x1xf32>
    %31 = arith.mulf %29, %30 : vector<1x1xf32>
    %32 = vector.broadcast %31 : vector<1x1xf32> to vector<1x128xf32>
    %33 = arith.divf %27, %32 : vector<1x128xf32>
    %34 = vector.broadcast %33 : vector<1x128xf32> to vector<2x128xf32>
    %35 = arith.mulf %21, %34 : vector<2x128xf32>
    %c8 = arith.constant 8 : index
    %c0_14 = arith.constant 0 : index
    %36 = vector.load %arg2[%c8, %c0_14] : memref<136x128xf32, #tpu.memory_space<vmem>>, vector<128x128xf32>
    %cst_15 = arith.constant dense<0.000000e+00> : vector<2x128xf32>
    %37 = tpu.matmul %35, %36, %cst_15 {dimension_numbers = #tpu.dot_dimension_numbers<[1], [0], [0], [1], [0, 0, 1, 1], [], []>} : vector<2x128xf32>, vector<128x128xf32>, vector<2x128xf32> -> vector<2x128xf32>
    %c3 = arith.constant 3 : index
    %c0_16 = arith.constant 0 : index
    %38 = vector.load %arg2[%c3, %c0_16] : memref<136x128xf32, #tpu.memory_space<vmem>>, vector<1x128xf32>
    %39 = vector.broadcast %38 : vector<1x128xf32> to vector<2x128xf32>
    %40 = arith.addf %37, %39 : vector<2x128xf32>
    %cst_17 = arith.constant 0.000000e+00 : f32
    %41 = vector.broadcast %cst_17 : f32 to vector<5x128xf32>
    %42 = tpu.concatenate %40, %33, %41 in 0 : vector<2x128xf32>, vector<1x128xf32>, vector<5x128xf32> -> vector<8x128xf32>
    %c0_18 = arith.constant 0 : index
    %c0_19 = arith.constant 0 : index
    %43 = vector.load %arg3[%c0_18, %c0_19] : memref<8x128xf32, #tpu.memory_space<vmem>>, vector<8x128xf32>
    tpu.vector_store %arg3[%c0_18, %c0_19], %42 {strides = array<i32>} : memref<8x128xf32, #tpu.memory_space<vmem>>, vector<8x128xf32>,
    return
  }
}

</mosaic_0001>

<bundles_post_ra>
// kernel: fe_param_dann_forward.1
= control target key start
LH: loop header
LB: loop body
LE: loop exit
PB: predicated region body
PF: predicated region fallthrough
CT: control target
= control target key end

     0   :  { %vm88_vm0 = vcmask 293888   ;;  %vm281_vm1 = vcmask 1043456   ;;  %vm903_vm2 = vcmask 1040384   ;;  %vm1498_vm15 = vmmov 0   ;;  %s1992_s1 = inlined_call_operand.vmem [shape: f32[36,128], index: 1, kind: input, shape index: {}]   ;;  %s1993_s0 = inlined_call_operand.vmem [shape: f32[512,36], index: 0, kind: input, shape index: {}]   ;;  %s1994_s2 = inlined_call_operand.vmem [shape: f32[136,128], index: 2, kind: input, shape index: {}]   ;;  %s1995_s3 = inlined_call_operand.vmem [shape: f32[8,128], index: 3, kind: output, shape index: {}]  }
   0x1   :  { %v78_v0 = vld [vmem:[%s1992_s1] sm:$0xff]  ;;  %v79_v1 = vld [vmem:[%s1992_s1 + $0x8] sm:$0xff]  ;;  %v80_v2 = vld [vmem:[%s1992_s1 + $0x10] sm:$0xff] }
   0x2   :  { %v1392_v3 = vpack.c.bf16 %v79_v1, %v78_v0  ;;  %v81_v4 = vld [vmem:[%s1992_s1 + $0x18] sm:$0xff]  ;;  %v14_v5 = vld [vmem:[%s1993_s0] sm:$0xff]  ;;  %v15_v8 = vld [vmem:[%s1993_s0 + $0x8] sm:$0xff] }
   0x3   :  { %v1396_v6 = vpack.c.bf16 %v81_v4, %v80_v2  ;;  %1261 = vmatprep.mubr.msk.f32.mxu0 %vm88_vm0, %v14_v5  ;;  %v82_v7 = vld [vmem:[%s1992_s1 + $0x20] sm:$0xf]  ;;  %v16_v9 = vld [vmem:[%s1993_s0 + $0x10] sm:$0xff]  ;;  %v17_v10 = vld [vmem:[%s1993_s0 + $0x18] sm:$0xff] }
   0x4   :  { %1393 = vmatprep.subr.bf16.mxu0 %v1392_v3  ;;  %v18_v11 = vld [vmem:[%s1993_s0 + $0x20] sm:$0xff]  ;;  %v19_v13 = vld [vmem:[%s1993_s0 + $0x28] sm:$0xff]  ;;  %v20_v15 = vld [vmem:[%s1993_s0 + $0x30] sm:$0xff] }
   0x5   :  { %1395 = vmatpush3.bf16.msra.mxu0 %v1392_v3  ;;  %v1557_v12 = vld [vmem:[%s1994_s2 + $0x1] sm:$0x1]  ;;  %v21_v16 = vld [vmem:[%s1993_s0 + $0x38] sm:$0xff]  ;;  %v23_v18 = vld [vmem:[%s1993_s0 + $0x48] sm:$0xff] }
   0x6   :  { %1397 = vmatprep.subr.bf16.mxu0 %v1396_v6  ;;  %v904_v14 = vsel %vm903_vm2, %v1557_v12, -inf  ;;  %v22_v17 = vld [vmem:[%s1993_s0 + $0x40] sm:$0xff]  ;;  %v24_v19 = vld [vmem:[%s1993_s0 + $0x50] sm:$0xff]  ;;  %v25_v20 = vld [vmem:[%s1993_s0 + $0x58] sm:$0xff] }
   0x7   :  { %905 = vmax.xlane.f32.xlu0 %v904_v14  ;;  %v26_v21 = vld [vmem:[%s1993_s0 + $0x60] sm:$0xff]  ;;  %v27_v22 = vld [vmem:[%s1993_s0 + $0x68] sm:$0xff]  ;;  %v28_v23 = vld [vmem:[%s1993_s0 + $0x70] sm:$0xff] }
   0x8   :  { %v29_v24 = vld [vmem:[%s1993_s0 + $0x78] sm:$0xff]  ;;  %v30_v25 = vld [vmem:[%s1993_s0 + $0x80] sm:$0xff]  ;;  %v31_v26 = vld [vmem:[%s1993_s0 + $0x88] sm:$0xff] }
   0x9   :  { %1399 = vmatpush3.bf16.msra.mxu0 %v1396_v6  ;;  %v32_v27 = vld [vmem:[%s1993_s0 + $0x90] sm:$0xff]  ;;  %v33_v28 = vld [vmem:[%s1993_s0 + $0x98] sm:$0xff]  ;;  %v34_v29 = vld [vmem:[%s1993_s0 + $0xa0] sm:$0xff] }
   0xa   :  { %1259 = vmatprep.subr.msk.mxu0 %vm281_vm1, %v82_v7  ;;  %v35_v30 = vld [vmem:[%s1993_s0 + $0xa8] sm:$0xff]  ;;  %v36_v31 = vld [vmem:[%s1993_s0 + $0xb0] sm:$0xff]  ;;  %v37_v32 = vld [vmem:[%s1993_s0 + $0xb8] sm:$0xff] }
   0xb   :  { %v38_v33 = vld [vmem:[%s1993_s0 + $0xc0] sm:$0xff]  ;;  %v39_v34 = vld [vmem:[%s1993_s0 + $0xc8] sm:$0xff]  ;;  %v40_v35 = vld [vmem:[%s1993_s0 + $0xd0] sm:$0xff] }
   0xc   :  { %v41_v36 = vld [vmem:[%s1993_s0 + $0xd8] sm:$0xff]  ;;  %v42_v37 = vld [vmem:[%s1993_s0 + $0xe0] sm:$0xff]  ;;  %v43_v38 = vld [vmem:[%s1993_s0 + $0xe8] sm:$0xff] }
   0xd   :  { %1260 = vmatpush3.msk.msra.mxu0 %vm281_vm1, %v82_v7  ;;  %v44_v39 = vld [vmem:[%s1993_s0 + $0xf0] sm:$0xff]  ;;  %v45_v40 = vld [vmem:[%s1993_s0 + $0xf8] sm:$0xff]  ;;  %v46_v41 = vld [vmem:[%s1993_s0 + $0x100] sm:$0xff]  ;;  %vm1017_vm1 = vcmask 1042432  }
   0xe   :  { %1262 = vmatmul.mubr.msk.f32.vlgmr.msra.gmra.mrb[0].mxu0 %vm88_vm0, %v15_v8  ;;  %v47_v42 = vld [vmem:[%s1993_s0 + $0x108] sm:$0xff]  ;;  %v48_v43 = vld [vmem:[%s1993_s0 + $0x110] sm:$0xff]  ;;  %v49_v44 = vld [vmem:[%s1993_s0 + $0x118] sm:$0xff] }
   0xf   :  { %1264 = vmatprep.mubr.msk.f32.mxu0 %vm88_vm0, %v16_v9  ;;  %v50_v45 = vld [vmem:[%s1993_s0 + $0x120] sm:$0xff]  ;;  %v51_v46 = vld [vmem:[%s1993_s0 + $0x128] sm:$0xff]  ;;  %v52_v47 = vld [vmem:[%s1993_s0 + $0x130] sm:$0xff] }
  0x10   :  { %v53_v48 = vld [vmem:[%s1993_s0 + $0x138] sm:$0xff]  ;;  %v54_v49 = vld [vmem:[%s1993_s0 + $0x140] sm:$0xff]  ;;  %v55_v50 = vld [vmem:[%s1993_s0 + $0x148] sm:$0xff] }
  0x11   :  { %v56_v51 = vld [vmem:[%s1993_s0 + $0x150] sm:$0xff]  ;;  %v57_v52 = vld [vmem:[%s1993_s0 + $0x158] sm:$0xff]  ;;  %v58_v53 = vld [vmem:[%s1993_s0 + $0x160] sm:$0xff] }
  0x12   :  { %1265 = vmatmul.mubr.msk.f32.gmra.mrb[2].mxu0 %vm88_vm0, %v17_v10  ;;  %v59_v54 = vld [vmem:[%s1993_s0 + $0x168] sm:$0xff]  ;;  %v60_v55 = vld [vmem:[%s1993_s0 + $0x170] sm:$0xff]  ;;  %v61_v56 = vld [vmem:[%s1993_s0 + $0x178] sm:$0xff] }
  0x13   :  { %1267 = vmatprep.mubr.msk.f32.mxu0 %vm88_vm0, %v18_v11  ;;  %v62_v57 = vld [vmem:[%s1993_s0 + $0x180] sm:$0xff]  ;;  %v63_v58 = vld [vmem:[%s1993_s0 + $0x188] sm:$0xff]  ;;  %v64_v59 = vld [vmem:[%s1993_s0 + $0x190] sm:$0xff] }
  0x14   :  { %v65_v60 = vld [vmem:[%s1993_s0 + $0x198] sm:$0xff]  ;;  %v66_v61 = vld [vmem:[%s1993_s0 + $0x1a0] sm:$0xff]  ;;  %v67_v62 = vld [vmem:[%s1993_s0 + $0x1a8] sm:$0xff] }
  0x15   :  { %v68_v63 = vld [vmem:[%s1993_s0 + $0x1b0] sm:$0xff]  ;;  %v69_v0 = vld [vmem:[%s1993_s0 + $0x1b8] sm:$0xff]  ;;  %v70_v1 = vld [vmem:[%s1993_s0 + $0x1c0] sm:$0xff] }
  0x16   :  { %1268 = vmatmul.mubr.msk.f32.gmra.mrb[4].mxu0 %vm88_vm0, %v19_v13  ;;  %v71_v2 = vld [vmem:[%s1993_s0 + $0x1c8] sm:$0xff]  ;;  %v72_v3 = vld [vmem:[%s1993_s0 + $0x1d0] sm:$0xff]  ;;  %v73_v4 = vld [vmem:[%s1993_s0 + $0x1d8] sm:$0xff] }
  0x17   :  { %1270 = vmatprep.mubr.msk.f32.mxu0 %vm88_vm0, %v20_v15  ;;  %v74_v5 = vld [vmem:[%s1993_s0 + $0x1e0] sm:$0xff]  ;;  %v75_v6 = vld [vmem:[%s1993_s0 + $0x1e8] sm:$0xff]  ;;  %v76_v7 = vld [vmem:[%s1993_s0 + $0x1f0] sm:$0xff]  ;;  %v734_v15 = vlaneseq }
  0x18   :  { %v77_v8 = vld [vmem:[%s1993_s0 + $0x1f8] sm:$0xff] }
  0x1a   :  { %1271 = vmatmul.mubr.msk.f32.gmra.mrb[6].mxu0 %vm88_vm0, %v21_v16  ;;  %v1803_v16 = vshrl.u32 %v734_v15, 7 }
  0x1b   :  { %1273 = vmatprep.mubr.msk.f32.mxu0 %vm88_vm0, %v22_v17  ;;  %v737_v17 = vand.u32 127, %v734_v15 }
  0x1e   :  { %1274 = vmatmul.mubr.msk.f32.gmra.mrb[8].mxu0 %vm88_vm0, %v23_v18  ;;  %v738_v18 = vadd.s32 128, %v737_v17 }
  0x1f   :  { %1276 = vmatprep.mubr.msk.f32.mxu0 %vm88_vm0, %v24_v19  ;;  %v741_v19 = vmul.u32 256, %v1803_v16 }
  0x22   :  { %1277 = vmatmul.mubr.msk.f32.gmra.mrb[10].mxu0 %vm88_vm0, %v25_v20  ;;  %v743_v20 = vsub.s32 %v738_v18, %v741_v19 }
  0x23   :  { %1279 = vmatprep.mubr.msk.f32.mxu0 %vm88_vm0, %v26_v21  ;;  %v1806_v21 = vsub.s32 %v737_v17, %v741_v19 }
  0x24   :  { %vm747_vm3 = vcmp.ge.s32.totalorder %v743_v20, 0  ;;  %vm751_vm4 = vcmp.lt.s32.totalorder %v743_v20, 256 }
  0x25   :  { %vm755_vm5 = vmand %vm747_vm3, %vm751_vm4  ;;  %vm746_vm6 = vcmp.ge.s32.totalorder %v1806_v21, 0  ;;  %vm750_vm7 = vcmp.lt.s32.totalorder %v1806_v21, 256 }
  0x26   :  { %1280 = vmatmul.mubr.msk.f32.gmra.mrb[12].mxu0 %vm88_vm0, %v27_v22  ;;  %v1812_v22 = vld [vmem:[%s1994_s2] ss:$0 sm:$0xff]  ;;  %vm754_vm10 = vmand %vm746_vm6, %vm750_vm7 }
  0x27   :  { %1282 = vmatprep.mubr.msk.f32.mxu0 %vm88_vm0, %v28_v23 }
  0x2a   :  { %1283 = vmatmul.mubr.msk.f32.gmra.mrb[14].mxu0 %vm88_vm0, %v29_v24 }
  0x2b   :  { %1285 = vmatprep.mubr.msk.f32.mxu0 %vm88_vm0, %v30_v25 }
  0x2e   :  { %1286 = vmatmul.mubr.msk.f32.gmra.mrb[16].mxu0 %vm88_vm0, %v31_v26  ;;  %v740_v26 = vadd.s32 384, %v737_v17 }
  0x2f   :  { %1288 = vmatprep.mubr.msk.f32.mxu0 %vm88_vm0, %v32_v27 }
  0x32   :  { %1289 = vmatmul.mubr.msk.f32.gmra.mrb[18].mxu0 %vm88_vm0, %v33_v28  ;;  %v739_v28 = vadd.s32 256, %v737_v17 }
  0x33   :  { %1291 = vmatprep.mubr.msk.f32.mxu0 %vm88_vm0, %v34_v29 }
  0x36   :  { %1292 = vmatmul.mubr.msk.f32.gmra.mrb[20].mxu0 %vm88_vm0, %v35_v30  ;;  %v1816_v30 = vsub.s32 %v740_v26, %v741_v19 }
  0x37   :  { %1294 = vmatprep.mubr.msk.f32.mxu0 %vm88_vm0, %v36_v31 }
  0x38   :  { %vm749_vm8 = vcmp.ge.s32.totalorder %v1816_v30, 0  ;;  %vm753_vm9 = vcmp.lt.s32.totalorder %v1816_v30, 256 }
  0x39   :  { %vm757_vm11 = vmand %vm749_vm8, %vm753_vm9 }
  0x3a   :  { %1295 = vmatmul.mubr.msk.f32.gmra.mrb[22].mxu0 %vm88_vm0, %v37_v32 }
  0x3b   :  { %1297 = vmatprep.mubr.msk.f32.mxu0 %vm88_vm0, %v38_v33  ;;  %v1818_v33 = vsub.s32 %v739_v28, %v741_v19 }
  0x3d   :  { %vm748_vm12 = vcmp.ge.s32.totalorder %v1818_v33, 0  ;;  %vm752_vm13 = vcmp.lt.s32.totalorder %v1818_v33, 256 }
  0x3e   :  { %1298 = vmatmul.mubr.msk.f32.gmra.mrb[24].mxu0 %vm88_vm0, %v39_v34  ;;  %vm756_vm14 = vmand %vm748_vm12, %vm752_vm13 }
  0x3f   :  { %1300 = vmatprep.mubr.msk.f32.mxu0 %vm88_vm0, %v40_v35 }
  0x42   :  { %1301 = vmatmul.mubr.msk.f32.gmra.mrb[26].mxu0 %vm88_vm0, %v41_v36 }
  0x43   :  { %1303 = vmatprep.mubr.msk.f32.mxu0 %vm88_vm0, %v42_v37 }
  0x46   :  { %1304 = vmatmul.mubr.msk.f32.gmra.mrb[28].mxu0 %vm88_vm0, %v43_v38 }
  0x47   :  { %1306 = vmatprep.mubr.msk.f32.mxu0 %vm88_vm0, %v44_v39 }
  0x4a   :  { %1307 = vmatmul.mubr.msk.f32.gmra.mrb[30].mxu0 %vm88_vm0, %v45_v40 }
  0x4b   :  { %1309 = vmatprep.mubr.msk.f32.mxu0 %vm88_vm0, %v46_v41 }
  0x4e   :  { %1310 = vmatmul.mubr.msk.f32.gmra.mrb[32].mxu0 %vm88_vm0, %v47_v42 }
  0x4f   :  { %1312 = vmatprep.mubr.msk.f32.mxu0 %vm88_vm0, %v48_v43 }
  0x52   :  { %1313 = vmatmul.mubr.msk.f32.gmra.mrb[34].mxu0 %vm88_vm0, %v49_v44 }
  0x53   :  { %1315 = vmatprep.mubr.msk.f32.mxu0 %vm88_vm0, %v50_v45 }
  0x56   :  { %1316 = vmatmul.mubr.msk.f32.gmra.mrb[36].mxu0 %vm88_vm0, %v51_v46 }
  0x57   :  { %1318 = vmatprep.mubr.msk.f32.mxu0 %vm88_vm0, %v52_v47 }
  0x5a   :  { %1319 = vmatmul.mubr.msk.f32.gmra.mrb[38].mxu0 %vm88_vm0, %v53_v48 }
  0x5b   :  { %1321 = vmatprep.mubr.msk.f32.mxu0 %vm88_vm0, %v54_v49 }
  0x5e   :  { %1322 = vmatmul.mubr.msk.f32.gmra.mrb[40].mxu0 %vm88_vm0, %v55_v50 }
  0x5f   :  { %1324 = vmatprep.mubr.msk.f32.mxu0 %vm88_vm0, %v56_v51 }
  0x62   :  { %1325 = vmatmul.mubr.msk.f32.gmra.mrb[42].mxu0 %vm88_vm0, %v57_v52 }
  0x63   :  { %1327 = vmatprep.mubr.msk.f32.mxu0 %vm88_vm0, %v58_v53 }
  0x66   :  { %1328 = vmatmul.mubr.msk.f32.gmra.mrb[44].mxu0 %vm88_vm0, %v59_v54 }
  0x67   :  { %1330 = vmatprep.mubr.msk.f32.mxu0 %vm88_vm0, %v60_v55 }
  0x6a   :  { %1331 = vmatmul.mubr.msk.f32.gmra.mrb[46].mxu0 %vm88_vm0, %v61_v56 }
  0x6b   :  { %1333 = vmatprep.mubr.msk.f32.mxu0 %vm88_vm0, %v62_v57 }
  0x6e   :  { %1334 = vmatmul.mubr.msk.f32.gmra.mrb[48].mxu0 %vm88_vm0, %v63_v58 }
  0x6f   :  { %1336 = vmatprep.mubr.msk.f32.mxu0 %vm88_vm0, %v64_v59 }
  0x72   :  { %1337 = vmatmul.mubr.msk.f32.gmra.mrb[50].mxu0 %vm88_vm0, %v65_v60 }
  0x73   :  { %1339 = vmatprep.mubr.msk.f32.mxu0 %vm88_vm0, %v66_v61 }
  0x76   :  { %1340 = vmatmul.mubr.msk.f32.gmra.mrb[52].mxu0 %vm88_vm0, %v67_v62 }
  0x77   :  { %1342 = vmatprep.mubr.msk.f32.mxu0 %vm88_vm0, %v68_v63 }
  0x7a   :  { %1343 = vmatmul.mubr.msk.f32.gmra.mrb[54].mxu0 %vm88_vm0, %v69_v0 }
  0x7b   :  { %1345 = vmatprep.mubr.msk.f32.mxu0 %vm88_vm0, %v70_v1 }
  0x7e   :  { %1346 = vmatmul.mubr.msk.f32.gmra.mrb[56].mxu0 %vm88_vm0, %v71_v2 }
  0x7f   :  { %1348 = vmatprep.mubr.msk.f32.mxu0 %vm88_vm0, %v72_v3 }
  0x82   :  { %1349 = vmatmul.mubr.msk.f32.gmra.mrb[58].mxu0 %vm88_vm0, %v73_v4 }
  0x83   :  { %1351 = vmatprep.mubr.msk.f32.mxu0 %vm88_vm0, %v74_v5 }
  0x86   :  { %1352 = vmatmul.mubr.msk.f32.gmra.mrb[60].mxu0 %vm88_vm0, %v75_v6 }
  0x87   :  { %1354 = vmatprep.mubr.msk.f32.mxu0 %vm88_vm0, %v76_v7 }
  0x8a   :  { %1355 = vmatmul.mubr.msk.f32.gmra.mrb[62].mxu0 %vm88_vm0, %v77_v8  ;;  %vm1015_vm0 = vcmask 1041408  }
  0x94   :  { %v906_v9 = vpop.xlane.xlu0 %905 }
  0x95   :  { %v907_v10 = vsub.f32 %v1557_v12, %v906_v9  ;;  %v1496_v12 = vmov 0.00390625  }
  0x96   :  { %1090 = vmatprep.mubr.msk.f32.mxu1 %vm755_vm5, %v1496_v12 }
  0x97   :  { %v908_v11 = vmul.f32 1.442695, %v907_v10 }
  0x99   :  { %1492 = vpow2.f32 %v908_v11 }
  0xa3   :  { %v1799_v13 = vpop.eup %1492 }
  0xa4   :  { %v910_v14 = vsel %vm903_vm2, %v1799_v13, 0.0 }
  0xa5   :  { %911 = vadd.xlane.f32.xlu0 %v910_v14 }
  0xe1   :  { %v1263_v23 = vpop.f32.mrb[0].mxu0 }
  0xe2   :  { %v357_v24 = vadd.f32 %v1263_v23, %v1812_v22  ;;  %v351_v25 = vpop.f32.mrb[1].mxu0 }
  0xe3   :  { %v352_v27 = vadd.f32 %v1812_v22, %v351_v25 }
  0xe4   :  { %v671_v29 = vmax.f32 %v357_v24, 0.0 }
  0xe5   :  { %v670_v31 = vmax.f32 %v352_v27, 0.0  ;;  %v1266_v32 = vpop.f32.mrb[2].mxu0 }
  0xe6   :  { %v367_v34 = vadd.f32 %v1266_v32, %v1812_v22  ;;  %v361_v35 = vpop.f32.mrb[3].mxu0 }
  0xe7   :  { %v362_v36 = vadd.f32 %v1812_v22, %v361_v35  ;;  %v1402_v37 = vpack.c.bf16 %v671_v29, %v670_v31 }
  0xe8   :  { %v673_v38 = vmax.f32 %v367_v34, 0.0 }
  0xe9   :  { %v672_v39 = vmax.f32 %v362_v36, 0.0  ;;  %v1269_v40 = vpop.f32.mrb[4].mxu0 }
  0xea   :  { %v377_v41 = vadd.f32 %v1269_v40, %v1812_v22  ;;  %v371_v42 = vpop.f32.mrb[5].mxu0 }
  0xeb   :  { %v1823_v43 = vpack.c.bf16 %v673_v38, %v672_v39  ;;  %v372_v44 = vadd.f32 %v1812_v22, %v371_v42 }
  0xec   :  { %v675_v45 = vmax.f32 %v377_v41, 0.0 }
  0xed   :  { %v674_v46 = vmax.f32 %v372_v44, 0.0  ;;  %v1272_v47 = vpop.f32.mrb[6].mxu0 }
  0xee   :  { %v387_v48 = vadd.f32 %v1272_v47, %v1812_v22  ;;  %v381_v49 = vpop.f32.mrb[7].mxu0 }
  0xef   :  { %v1827_v50 = vpack.c.bf16 %v675_v45, %v674_v46  ;;  %v382_v51 = vadd.f32 %v1812_v22, %v381_v49 }
  0xf0   :  { %v677_v52 = vmax.f32 %v387_v48, 0.0 }
  0xf1   :  { %v676_v53 = vmax.f32 %v382_v51, 0.0  ;;  %v1275_v54 = vpop.f32.mrb[8].mxu0 }
  0xf2   :  { %v397_v55 = vadd.f32 %v1275_v54, %v1812_v22  ;;  %v391_v56 = vpop.f32.mrb[9].mxu0 }
  0xf3   :  { %v1831_v57 = vpack.c.bf16 %v677_v52, %v676_v53  ;;  %v392_v58 = vadd.f32 %v1812_v22, %v391_v56 }
  0xf4   :  { %v679_v59 = vmax.f32 %v397_v55, 0.0 }
  0xf5   :  { %v678_v60 = vmax.f32 %v392_v58, 0.0  ;;  %v1278_v61 = vpop.f32.mrb[10].mxu0 }
  0xf6   :  { %v407_v62 = vadd.f32 %v1278_v61, %v1812_v22  ;;  %v401_v63 = vpop.f32.mrb[11].mxu0 }
  0xf7   :  { %v1835_v0 = vpack.c.bf16 %v679_v59, %v678_v60  ;;  %v402_v1 = vadd.f32 %v1812_v22, %v401_v63 }
  0xf8   :  { %v681_v2 = vmax.f32 %v407_v62, 0.0 }
  0xf9   :  { %v680_v3 = vmax.f32 %v402_v1, 0.0  ;;  %v1281_v4 = vpop.f32.mrb[12].mxu0 }
  0xfa   :  { %v417_v5 = vadd.f32 %v1281_v4, %v1812_v22  ;;  %v411_v6 = vpop.f32.mrb[13].mxu0 }
  0xfb   :  { %v1839_v7 = vpack.c.bf16 %v681_v2, %v680_v3  ;;  %v412_v8 = vadd.f32 %v1812_v22, %v411_v6 }
  0xfc   :  { %v683_v9 = vmax.f32 %v417_v5, 0.0 }
  0xfd   :  { %v682_v10 = vmax.f32 %v412_v8, 0.0  ;;  %v1284_v11 = vpop.f32.mrb[14].mxu0 }
  0xfe   :  { %v427_v14 = vadd.f32 %v1284_v11, %v1812_v22  ;;  %v421_v15 = vpop.f32.mrb[15].mxu0 }
  0xff   :  { %v1843_v17 = vpack.c.bf16 %v683_v9, %v682_v10  ;;  %v422_v18 = vadd.f32 %v1812_v22, %v421_v15 }
 0x100   :  { %v685_v19 = vmax.f32 %v427_v14, 0.0 }
 0x101   :  { %v684_v20 = vmax.f32 %v422_v18, 0.0  ;;  %v1287_v23 = vpop.f32.mrb[16].mxu0 }
 0x102   :  { %v437_v24 = vadd.f32 %v1287_v23, %v1812_v22  ;;  %v431_v25 = vpop.f32.mrb[17].mxu0 }
 0x103   :  { %v1847_v26 = vpack.c.bf16 %v685_v19, %v684_v20  ;;  %v432_v27 = vadd.f32 %v1812_v22, %v431_v25 }
 0x104   :  { %v687_v28 = vmax.f32 %v437_v24, 0.0 }
 0x105   :  { %v686_v29 = vmax.f32 %v432_v27, 0.0  ;;  %v1290_v31 = vpop.f32.mrb[18].mxu0 }
 0x106   :  { %v447_v32 = vadd.f32 %v1290_v31, %v1812_v22  ;;  %v441_v34 = vpop.f32.mrb[19].mxu0 }
 0x107   :  { %v442_v35 = vadd.f32 %v1812_v22, %v441_v34  ;;  %v1400_v36 = vpack.c.bf16 %v687_v28, %v686_v29 }
 0x108   :  { %v689_v38 = vmax.f32 %v447_v32, 0.0 }
 0x109   :  { %v688_v39 = vmax.f32 %v442_v35, 0.0  ;;  %v1293_v40 = vpop.f32.mrb[20].mxu0  ;;  %1401 = vmatprep.subr.bf16.mxu1 %v1400_v36 }
 0x10a   :  { %v457_v41 = vadd.f32 %v1293_v40, %v1812_v22  ;;  %v451_v42 = vpop.f32.mrb[21].mxu0  ;;  %1403 = vmatpush3.bf16.msra.mxu1 %v1402_v37 }
 0x10b   :  { %v1404_v44 = vpack.c.bf16 %v689_v38, %v688_v39  ;;  %v452_v45 = vadd.f32 %v1812_v22, %v451_v42 }
 0x10c   :  { %v691_v46 = vmax.f32 %v457_v41, 0.0 }
 0x10d   :  { %v690_v47 = vmax.f32 %v452_v45, 0.0  ;;  %v1296_v48 = vpop.f32.mrb[22].mxu0  ;;  %1405 = vmatprep.subr.bf16.mxu1 %v1404_v44 }
 0x10e   :  { %v467_v49 = vadd.f32 %v1296_v48, %v1812_v22  ;;  %v461_v51 = vpop.f32.mrb[23].mxu0  ;;  %1407 = vmatpush3.bf16.msra.mxu1 %v1823_v43 }
 0x10f   :  { %v1408_v52 = vpack.c.bf16 %v691_v46, %v690_v47  ;;  %v462_v53 = vadd.f32 %v1812_v22, %v461_v51 }
 0x110   :  { %v693_v54 = vmax.f32 %v467_v49, 0.0 }
 0x111   :  { %v692_v55 = vmax.f32 %v462_v53, 0.0  ;;  %v1299_v56 = vpop.f32.mrb[24].mxu0  ;;  %1409 = vmatprep.subr.bf16.mxu1 %v1408_v52 }
 0x112   :  { %v477_v37 = vadd.f32 %v1299_v56, %v1812_v22  ;;  %v471_v58 = vpop.f32.mrb[25].mxu0  ;;  %1411 = vmatpush3.bf16.msra.mxu1 %v1827_v50 }
 0x113   :  { %v1412_v59 = vpack.c.bf16 %v693_v54, %v692_v55  ;;  %v472_v60 = vadd.f32 %v1812_v22, %v471_v58 }
 0x114   :  { %v695_v61 = vmax.f32 %v477_v37, 0.0 }
 0x115   :  { %v694_v62 = vmax.f32 %v472_v60, 0.0  ;;  %v1302_v63 = vpop.f32.mrb[26].mxu0  ;;  %1413 = vmatprep.subr.bf16.mxu1 %v1412_v59 }
 0x116   :  { %v487_v43 = vadd.f32 %v1302_v63, %v1812_v22  ;;  %v481_v1 = vpop.f32.mrb[27].mxu0  ;;  %1415 = vmatpush3.bf16.msra.mxu1 %v1831_v57 }
 0x117   :  { %v1416_v2 = vpack.c.bf16 %v695_v61, %v694_v62  ;;  %v482_v3 = vadd.f32 %v1812_v22, %v481_v1 }
 0x118   :  { %v697_v4 = vmax.f32 %v487_v43, 0.0 }
 0x119   :  { %v696_v5 = vmax.f32 %v482_v3, 0.0  ;;  %v1305_v6 = vpop.f32.mrb[28].mxu0  ;;  %1417 = vmatprep.subr.bf16.mxu1 %v1416_v2 }
 0x11a   :  { %v497_v50 = vadd.f32 %v1305_v6, %v1812_v22  ;;  %v491_v8 = vpop.f32.mrb[29].mxu0  ;;  %1419 = vmatpush3.bf16.msra.mxu1 %v1835_v0 }
 0x11b   :  { %v1420_v9 = vpack.c.bf16 %v697_v4, %v696_v5  ;;  %v492_v10 = vadd.f32 %v1812_v22, %v491_v8 }
 0x11c   :  { %v699_v11 = vmax.f32 %v497_v50, 0.0 }
 0x11d   :  { %v698_v14 = vmax.f32 %v492_v10, 0.0  ;;  %v1308_v15 = vpop.f32.mrb[30].mxu0  ;;  %1421 = vmatprep.subr.bf16.mxu1 %v1420_v9 }
 0x11e   :  { %v507_v57 = vadd.f32 %v1308_v15, %v1812_v22  ;;  %v501_v18 = vpop.f32.mrb[31].mxu0  ;;  %1423 = vmatpush3.bf16.msra.mxu1 %v1839_v7 }
 0x11f   :  { %v1424_v19 = vpack.c.bf16 %v699_v11, %v698_v14  ;;  %v502_v20 = vadd.f32 %v1812_v22, %v501_v18 }
 0x120   :  { %v701_v23 = vmax.f32 %v507_v57, 0.0 }
 0x121   :  { %v700_v24 = vmax.f32 %v502_v20, 0.0  ;;  %v1311_v25 = vpop.f32.mrb[32].mxu0  ;;  %1425 = vmatprep.subr.bf16.mxu1 %v1424_v19 }
 0x122   :  { %v517_v0 = vadd.f32 %v1311_v25, %v1812_v22  ;;  %v511_v27 = vpop.f32.mrb[33].mxu0  ;;  %1427 = vmatpush3.bf16.msra.mxu1 %v1843_v17 }
 0x123   :  { %v1428_v28 = vpack.c.bf16 %v701_v23, %v700_v24  ;;  %v512_v29 = vadd.f32 %v1812_v22, %v511_v27 }
 0x124   :  { %v703_v7 = vmax.f32 %v517_v0, 0.0 }
 0x125   :  { %v702_v31 = vmax.f32 %v512_v29, 0.0  ;;  %v1314_v32 = vpop.f32.mrb[34].mxu0  ;;  %1429 = vmatprep.subr.bf16.mxu1 %v1428_v28 }
 0x126   :  { %v527_v34 = vadd.f32 %v1314_v32, %v1812_v22  ;;  %v521_v35 = vpop.f32.mrb[35].mxu0  ;;  %1431 = vmatpush3.bf16.msra.mxu1 %v1847_v26 }
 0x127   :  { %v1878_v17 = vpack.c.bf16 %v703_v7, %v702_v31  ;;  %v522_v36 = vadd.f32 %v1812_v22, %v521_v35 }
 0x128   :  { %v705_v21 = vmax.f32 %v527_v34, 0.0 }
 0x129   :  { %v704_v38 = vmax.f32 %v522_v36, 0.0  ;;  %v1317_v39 = vpop.f32.mrb[36].mxu0  ;;  %1091 = vmatmul.mubr.msk.f32.vlgmr.msra.gmra.mrb[0].mxu1 %vm754_vm10, %v1496_v12 }
 0x12a   :  { %v537_v30 = vadd.f32 %v1317_v39, %v1812_v22  ;;  %v531_v40 = vpop.f32.mrb[37].mxu0  ;;  %1092 = vmatprep.mubr.msk.f32.mxu1 %vm757_vm11, %v1496_v12 }
 0x12b   :  { %v1884_v41 = vpack.c.bf16 %v705_v21, %v704_v38  ;;  %v532_v26 = vadd.f32 %v1812_v22, %v531_v40 }
 0x12c   :  { %v707_v42 = vmax.f32 %v537_v30, 0.0 }
 0x12d   :  { %v706_v44 = vmax.f32 %v532_v26, 0.0  ;;  %v1320_v45 = vpop.f32.mrb[38].mxu0 }
 0x12e   :  { %v547_v46 = vadd.f32 %v1320_v45, %v1812_v22  ;;  %v541_v47 = vpop.f32.mrb[39].mxu0 }
 0x12f   :  { %v1888_v48 = vpack.c.bf16 %v707_v42, %v706_v44  ;;  %v542_v49 = vadd.f32 %v1812_v22, %v541_v47 }
 0x130   :  { %v709_v51 = vmax.f32 %v547_v46, 0.0 }
 0x131   :  { %v708_v52 = vmax.f32 %v542_v49, 0.0  ;;  %v1323_v53 = vpop.f32.mrb[40].mxu0 }
 0x132   :  { %v557_v54 = vadd.f32 %v1323_v53, %v1812_v22  ;;  %v551_v55 = vpop.f32.mrb[41].mxu0 }
 0x133   :  { %v1892_v56 = vpack.c.bf16 %v709_v51, %v708_v52  ;;  %v552_v37 = vadd.f32 %v1812_v22, %v551_v55 }
 0x134   :  { %v711_v58 = vmax.f32 %v557_v54, 0.0 }
 0x135   :  { %v710_v59 = vmax.f32 %v552_v37, 0.0  ;;  %v1326_v60 = vpop.f32.mrb[42].mxu0 }
 0x136   :  { %v567_v61 = vadd.f32 %v1326_v60, %v1812_v22  ;;  %v561_v62 = vpop.f32.mrb[43].mxu0 }
 0x137   :  { %v1896_v63 = vpack.c.bf16 %v711_v58, %v710_v59  ;;  %v562_v43 = vadd.f32 %v1812_v22, %v561_v62 }
 0x138   :  { %v713_v1 = vmax.f32 %v567_v61, 0.0 }
 0x139   :  { %v712_v2 = vmax.f32 %v562_v43, 0.0  ;;  %v1329_v3 = vpop.f32.mrb[44].mxu0 }
 0x13a   :  { %v577_v4 = vadd.f32 %v1329_v3, %v1812_v22  ;;  %v571_v5 = vpop.f32.mrb[45].mxu0 }
 0x13b   :  { %v1900_v6 = vpack.c.bf16 %v713_v1, %v712_v2  ;;  %v572_v50 = vadd.f32 %v1812_v22, %v571_v5 }
 0x13c   :  { %v715_v8 = vmax.f32 %v577_v4, 0.0 }
 0x13d   :  { %v714_v9 = vmax.f32 %v572_v50, 0.0  ;;  %v1332_v10 = vpop.f32.mrb[46].mxu0 }
 0x13e   :  { %v587_v11 = vadd.f32 %v1332_v10, %v1812_v22  ;;  %v581_v14 = vpop.f32.mrb[47].mxu0 }
 0x13f   :  { %v1904_v15 = vpack.c.bf16 %v715_v8, %v714_v9  ;;  %v582_v57 = vadd.f32 %v1812_v22, %v581_v14 }
 0x140   :  { %v717_v18 = vmax.f32 %v587_v11, 0.0 }
 0x141   :  { %v716_v19 = vmax.f32 %v582_v57, 0.0  ;;  %v1335_v20 = vpop.f32.mrb[48].mxu0 }
 0x142   :  { %v597_v23 = vadd.f32 %v1335_v20, %v1812_v22  ;;  %v591_v24 = vpop.f32.mrb[49].mxu0  ;;  %v1497_v20 = vmov 0.0|0.0  }
 0x143   :  { %v1908_v25 = vpack.c.bf16 %v717_v18, %v716_v19  ;;  %v592_v0 = vadd.f32 %v1812_v22, %v591_v24  ;;  %v925_v24 = vld [vmem:[%s1994_s2 + $0x28] sm:$0xff] }
 0x144   :  { %v719_v27 = vmax.f32 %v597_v23, 0.0  ;;  %v924_v23 = vld [vmem:[%s1994_s2 + $0x20] sm:$0xff] }
 0x145   :  { %v718_v28 = vmax.f32 %v592_v0, 0.0  ;;  %v1338_v29 = vpop.f32.mrb[50].mxu0 }
 0x146   :  { %v607_v7 = vadd.f32 %v1338_v29, %v1812_v22  ;;  %v601_v31 = vpop.f32.mrb[51].mxu0 }
 0x147   :  { %v1432_v32 = vpack.c.bf16 %v719_v27, %v718_v28  ;;  %v602_v34 = vadd.f32 %v1812_v22, %v601_v31  ;;  %v927_v27 = vld [vmem:[%s1994_s2 + $0x38] sm:$0xff]  ;;  %v928_v28 = vld [vmem:[%s1994_s2 + $0x40] sm:$0xff]  ;;  %v930_v31 = vld [vmem:[%s1994_s2 + $0x50] sm:$0xff] }
 0x148   :  { %v721_v35 = vmax.f32 %v607_v7, 0.0  ;;  %v1474_v29 = vpack.c.bf16 %v928_v28, %v927_v27  ;;  %v929_v7 = vld [vmem:[%s1994_s2 + $0x48] sm:$0xff] }
 0x149   :  { %v720_v36 = vmax.f32 %v602_v34, 0.0  ;;  %v1341_v21 = vpop.f32.mrb[52].mxu0  ;;  %1433 = vmatprep.subr.bf16.mxu1 %v1432_v32  ;;  %v1477_v32 = vpack.c.bf16 %v930_v31, %v929_v7  ;;  %v931_v34 = vld [vmem:[%s1994_s2 + $0x58] sm:$0xff] }
 0x14a   :  { %v617_v38 = vadd.f32 %v1341_v21, %v1812_v22  ;;  %v611_v39 = vpop.f32.mrb[53].mxu0  ;;  %1435 = vmatpush3.bf16.msra.mxu1 %v1878_v17  ;;  %v933_v21 = vld [vmem:[%s1994_s2 + $0x68] sm:$0xff] }
 0x14b   :  { %v1436_v30 = vpack.c.bf16 %v721_v35, %v720_v36  ;;  %v612_v40 = vadd.f32 %v1812_v22, %v611_v39  ;;  %v932_v35 = vld [vmem:[%s1994_s2 + $0x60] sm:$0xff] }
 0x14c   :  { %v723_v26 = vmax.f32 %v617_v38, 0.0  ;;  %v1480_v36 = vpack.c.bf16 %v932_v35, %v931_v34  ;;  %v934_v38 = vld [vmem:[%s1994_s2 + $0x70] sm:$0xff] }
 0x14d   :  { %v722_v42 = vmax.f32 %v612_v40, 0.0  ;;  %v1344_v44 = vpop.f32.mrb[54].mxu0  ;;  %1437 = vmatprep.subr.bf16.mxu1 %v1436_v30  ;;  %v1483_v39 = vpack.c.bf16 %v934_v38, %v933_v21  ;;  %v935_v30 = vld [vmem:[%s1994_s2 + $0x78] sm:$0xff]  ;;  %v936_v40 = vld [vmem:[%s1994_s2 + $0x80] sm:$0xff] }
 0x14e   :  { %v627_v45 = vadd.f32 %v1344_v44, %v1812_v22  ;;  %v621_v46 = vpop.f32.mrb[55].mxu0  ;;  %1439 = vmatpush3.bf16.msra.mxu1 %v1884_v41 }
 0x14f   :  { %v1440_v47 = vpack.c.bf16 %v723_v26, %v722_v42  ;;  %v622_v49 = vadd.f32 %v1812_v22, %v621_v46  ;;  %v1486_v26 = vpack.c.bf16 %v936_v40, %v935_v30  ;;  %v1499_v42 = vmov 0.0  }
 0x150   :  { %v725_v51 = vmax.f32 %v627_v45, 0.0 }
 0x151   :  { %v724_v52 = vmax.f32 %v622_v49, 0.0  ;;  %v1347_v53 = vpop.f32.mrb[56].mxu0  ;;  %1441 = vmatprep.subr.bf16.mxu1 %v1440_v47  ;;  %v912_v47 = vpop.xlane.xlu0 %911 }
 0x152   :  { %v637_v17 = vadd.f32 %v1347_v53, %v1812_v22  ;;  %v631_v54 = vpop.f32.mrb[57].mxu0  ;;  %1443 = vmatpush3.bf16.msra.mxu1 %v1888_v48  ;;  %v913_v49 = vmul.f32 0.03125, %v912_v47 }
 0x153   :  { %v1444_v55 = vpack.c.bf16 %v725_v51, %v724_v52  ;;  %v632_v37 = vadd.f32 %v1812_v22, %v631_v54 }
 0x154   :  { %v727_v58 = vmax.f32 %v637_v17, 0.0  ;;  %1494 = vrcp.f32 %v913_v49  ;;  %v918_v17 = vsub.s32 0, %v1803_v16 }
 0x155   :  { %v726_v59 = vmax.f32 %v632_v37, 0.0  ;;  %v1350_v60 = vpop.f32.mrb[58].mxu0  ;;  %1445 = vmatprep.subr.bf16.mxu1 %v1444_v55 }
 0x156   :  { %v647_v41 = vadd.f32 %v1350_v60, %v1812_v22  ;;  %v641_v61 = vpop.f32.mrb[59].mxu0  ;;  %1447 = vmatpush3.bf16.msra.mxu1 %v1892_v56  ;;  %v1094_v60 = vld [vmem:[%s1994_s2 + $0x3] ss:$0 sm:$0xff] }
 0x157   :  { %v1448_v62 = vpack.c.bf16 %v727_v58, %v726_v59  ;;  %v642_v43 = vadd.f32 %v1812_v22, %v641_v61 }
 0x158   :  { %v729_v1 = vmax.f32 %v647_v41, 0.0 }
 0x159   :  { %v728_v2 = vmax.f32 %v642_v43, 0.0  ;;  %v1353_v3 = vpop.f32.mrb[60].mxu0  ;;  %1449 = vmatprep.subr.bf16.mxu1 %v1448_v62 }
 0x15a   :  { %v657_v48 = vadd.f32 %v1353_v3, %v1812_v22  ;;  %v651_v4 = vpop.f32.mrb[61].mxu0  ;;  %1451 = vmatpush3.bf16.msra.mxu1 %v1896_v63 }
 0x15b   :  { %v1452_v5 = vpack.c.bf16 %v729_v1, %v728_v2  ;;  %v652_v50 = vadd.f32 %v1812_v22, %v651_v4 }
 0x15c   :  { %v731_v8 = vmax.f32 %v657_v48, 0.0 }
 0x15d   :  { %v730_v9 = vmax.f32 %v652_v50, 0.0  ;;  %v1356_v10 = vpop.f32.mrb[62].mxu0  ;;  %1453 = vmatprep.subr.bf16.mxu1 %v1452_v5 }
 0x15e   :  { %v667_v56 = vadd.f32 %v1356_v10, %v1812_v22  ;;  %v661_v11 = vpop.f32.mrb[63].mxu0  ;;  %1455 = vmatpush3.bf16.msra.mxu1 %v1900_v6  ;;  %v922_v6 = vld [vmem:[%s1994_s2 + $0x10] sm:$0xff]  ;;  %v1495_v51 = vpop.eup %1494 }
 0x15f   :  { %v1456_v14 = vpack.c.bf16 %v731_v8, %v730_v9  ;;  %v662_v57 = vadd.f32 %v1812_v22, %v661_v11  ;;  %v921_v22 = vld [vmem:[%s1994_s2 + $0x8] sm:$0xff]  ;;  %v915_v53 = vmul.f32 %v1495_v51, %v1799_v13 }
 0x160   :  { %v733_v18 = vmax.f32 %v667_v56, 0.0  ;;  %v1465_v33 = vpack.c.bf16 %v922_v6, %v921_v22 }
 0x161   :  { %v732_v19 = vmax.f32 %v662_v57, 0.0  ;;  %1457 = vmatprep.subr.bf16.mxu1 %v1456_v14  ;;  %v919_v58 = vrot.slane %v915_v53, %v918_v17  ;;  %v1013_v62 = vrot.slane %v915_v53, 6 }
 0x162   :  { %1459 = vmatpush3.bf16.msra.mxu1 %v1904_v15  ;;  %v923_v15 = vld [vmem:[%s1994_s2 + $0x18] sm:$0xff] }
 0x163   :  { %v1460_v63 = vpack.c.bf16 %v733_v18, %v732_v19 }
 0x165   :  { %1461 = vmatprep.subr.bf16.mxu1 %v1460_v63 }
 0x166   :  { %1463 = vmatpush3.bf16.msra.mxu1 %v1908_v25  ;;  %v926_v25 = vld [vmem:[%s1994_s2 + $0x30] sm:$0xff] }
 0x167   :  { %1464 = vmatprep.subr.bf16.mxu1 %v1497_v20  ;;  %v1471_v0 = vpack.c.bf16 %v926_v25, %v925_v24 }
 0x169   :  { %1093 = vmatmul.mubr.msk.f32.vlgmr.msra.gmra.mrb[2].mxu1 %vm756_vm14, %v1496_v12  ;;  %v1468_v12 = vpack.c.bf16 %v924_v23, %v923_v15 }
 0x16a   :  { %1466 = vmatpush3.bf16.msra.mxu1 %v1465_v33  ;;  %1389 = vmatprep.mubr.msk.f32.mxu1 %vm1498_vm15, %v1499_v42 }
 0x16b   :  { %1467 = vmatprep.subr.bf16.mxu1 %v1497_v20 }
 0x16e   :  { %1469 = vmatpush3.bf16.msra.mxu1 %v1468_v12 }
 0x16f   :  { %1470 = vmatprep.subr.bf16.mxu1 %v1497_v20 }
 0x172   :  { %1472 = vmatpush3.bf16.msra.mxu1 %v1471_v0 }
 0x173   :  { %1473 = vmatprep.subr.bf16.mxu1 %v1497_v20 }
 0x176   :  { %1475 = vmatpush3.bf16.msra.mxu1 %v1474_v29 }
 0x177   :  { %1476 = vmatprep.subr.bf16.mxu1 %v1497_v20 }
 0x17a   :  { %1478 = vmatpush3.bf16.msra.mxu1 %v1477_v32 }
 0x17b   :  { %1479 = vmatprep.subr.bf16.mxu1 %v1497_v20 }
 0x17e   :  { %1481 = vmatpush3.bf16.msra.mxu1 %v1480_v36 }
 0x17f   :  { %1482 = vmatprep.subr.bf16.mxu1 %v1497_v20 }
 0x182   :  { %1484 = vmatpush3.bf16.msra.mxu1 %v1483_v39 }
 0x183   :  { %1485 = vmatprep.subr.bf16.mxu1 %v1497_v20 }
 0x186   :  { %1487 = vmatpush3.bf16.msra.mxu1 %v1486_v26 }
 0x1fc   :  { %v1196_v44 = vpop.f32.mrb[0].mxu1 }
 0x1fd   :  { %v1197_v45 = vpop.f32.mrb[1].mxu1 }
 0x1fe   :  { %v1198_v46 = vadd.f32 %v1197_v45, %v1196_v44 }
 0x23c   :  { %v1231_v52 = vpop.f32.mrb[2].mxu1 }
 0x23d   :  { %v1232_v54 = vpop.f32.mrb[3].mxu1 }
 0x23e   :  { %v1233_v55 = vadd.f32 %v1232_v54, %v1231_v52 }
 0x240   :  { %v899_v37 = vadd.f32 %v1233_v55, %v1198_v46 }
 0x242   :  { %v920_v59 = vmul.f32 %v919_v58, %v899_v37 }
 0x244   :  { %1390 = vmatmul.mubr.f32.vlgmr.msra.gmra.mrb[4].mxu1 %v920_v59 }
 0x317   :  { %v1008_v41 = vpop.f32.mrb[4].mxu1 }
 0x318   :  { %v1009_v61 = vadd.f32 %v1094_v60, %v1008_v41  ;;  %v1391_v43 = vpop.f32.mrb[5].mxu1 }
 0x31a   :  { %v1016_v1 = vsel %vm1015_vm0, %v1009_v61, %v1013_v62 }
 0x31b   :  { %v1018_v13 = vsel %vm1017_vm1, %v1016_v1, 0.0 }
 0x31c   :  { %1019 = vst [vmem:[%s1995_s3] sm:$0xff] %v1018_v13 }

</bundles_post_ra>
